<compile_context>
chip_gen: v7x
topology: tpu7x:2x2x1
jax: 0.10.0
libtpu: 0.0.40
codegen_flags: <defaults>
</compile_context>

<pallas_src>
import math

import jax
import jax.numpy as jnp
from jax.experimental import pallas as pl
from jax.experimental.pallas import tpu as pltpu


def _round_up(a: int, m: int) -> int:
    return (a + m - 1) // m * m


# ---------------------------------------------------------------------------
# Pallas kernel: full forward pass of the Critic MLP for one batch tile.
# ---------------------------------------------------------------------------
def critic_kernel(xs_ref, xa_ref,
                  w1s_ref, w1a_ref, b1_ref,
                  w2_ref, b2_ref,
                  w3_ref, b3_ref,
                  w4_ref, b4_ref,
                  o_ref):
    # fc1: split matmul over the state / action feature blocks (no concat),
    # bf16 inputs, f32 accumulation on the MXU.
    h1 = jnp.dot(xs_ref[...], w1s_ref[...], preferred_element_type=jnp.float32)
    h1 = h1 + jnp.dot(xa_ref[...], w1a_ref[...], preferred_element_type=jnp.float32)
    h1 = jnp.maximum(h1 + b1_ref[...], 0.0)

    # dropout(p=0.1): identity in eval/inference mode (matches module.eval()).
    # TODO(synk): training-mode dropout would use pltpu.prng_seed + stateful_bernoulli.

    # fc2 + ReLU
    h2 = jnp.dot(h1.astype(jnp.bfloat16), w2_ref[...],
                 preferred_element_type=jnp.float32)
    h2 = jnp.maximum(h2 + b2_ref[...], 0.0)

    # fc3 + ReLU
    h3 = jnp.dot(h2.astype(jnp.bfloat16), w3_ref[...],
                 preferred_element_type=jnp.float32)
    h3 = jnp.maximum(h3 + b3_ref[...], 0.0)

    # fc4 (N=1): VPU multiply + lane reduction instead of a near-empty MXU pass.
    q = jnp.sum(h3 * w4_ref[...], axis=-1, keepdims=True) + b4_ref[...]
    o_ref[...] = q.astype(o_ref.dtype)


# ---------------------------------------------------------------------------
# Wrapper
# ---------------------------------------------------------------------------
def critic_forward(states, actions, params, *, block_b: int = 512):
    """states: (B, num_agents, state_dim), actions: (B, num_agents, action_dim)."""
    B = states.shape[0]
    (w1s, w1a, b1), (w2, b2), (w3, b3), (w4, b4) = params
    ds = w1s.shape[0]
    da = w1a.shape[0]

    # Flatten (torch .view) and cast activations to bf16; no concat needed.
    xs = states.reshape(B, -1).astype(jnp.bfloat16)
    xa = actions.reshape(B, -1).astype(jnp.bfloat16)

    # Batch tile: multiple of 16 sublanes (bf16 packing), bounded by block_b.
    # block_b=512 keeps the per-step VMEM footprint (~2 MiB activations +
    # ~0.4 MiB bf16 weights + double-buffered x tiles) far under v7x's budget.
    tb = min(block_b, _round_up(B, 16))
    bp = _round_up(B, tb)
    if bp != B:
        xs = jnp.pad(xs, ((0, bp - B), (0, 0)))
        xa = jnp.pad(xa, ((0, bp - B), (0, 0)))

    def const_spec(a):
        nd = a.ndim
        return pl.BlockSpec(a.shape, lambda i, _nd=nd: (0,) * _nd)

    out = pl.pallas_call(
        critic_kernel,
        out_shape=jax.ShapeDtypeStruct((bp, 1), jnp.float32),
        grid_spec=pltpu.PrefetchScalarGridSpec(
            num_scalar_prefetch=0,
            grid=(bp // tb,),
            in_specs=[
                pl.BlockSpec((tb, ds), lambda i: (i, 0)),   # states tile
                pl.BlockSpec((tb, da), lambda i: (i, 0)),   # actions tile
                const_spec(w1s), const_spec(w1a), const_spec(b1),
                const_spec(w2), const_spec(b2),
                const_spec(w3), const_spec(b3),
                const_spec(w4), const_spec(b4),
            ],
            out_specs=pl.BlockSpec((tb, 1), lambda i: (i, 0)),
        ),
        compiler_params=pltpu.CompilerParams(
            dimension_semantics=("parallel",),  # megacore sharding on v7x
        ),
    )(xs, xa, w1s, w1a, b1, w2, b2, w3, b3, w4, b4)
    return out[:B]


# ---------------------------------------------------------------------------
# Deterministic parameter init (same distribution as torch.nn.Linear default:
# U(-1/sqrt(fan_in), 1/sqrt(fan_in)) for both weight and bias).
# Weights stored as (in_features, out_features); matmul weights in bf16,
# biases + fc4 row in f32.
# ---------------------------------------------------------------------------
def init_critic_params(key, state_dim, action_dim, num_agents):
    ds = state_dim * num_agents
    da = action_dim * num_agents
    k1, k2, k3, k4 = jax.random.split(key, 4)

    def lin(k, din, dout, wdtype=jnp.bfloat16):
        kw, kb = jax.random.split(k)
        bound = 1.0 / math.sqrt(din)
        w = jax.random.uniform(kw, (din, dout), jnp.float32, -bound, bound)
        b = jax.random.uniform(kb, (1, dout), jnp.float32, -bound, bound)
        return w.astype(wdtype), b

    # fc1, split by rows into state / action parts (both share fan_in = ds+da).
    w1, b1 = lin(k1, ds + da, 512)
    layer1 = (w1[:ds], w1[ds:], b1)
    layer2 = lin(k2, 512, 256)
    layer3 = lin(k3, 256, 128)
    # fc4 stored as a (1, 128) f32 row (used as a lane reduction, not a matmul).
    w4t, b4 = lin(k4, 128, 1, wdtype=jnp.float32)   # (128, 1) f32
    layer4 = (w4t.reshape(1, 128), b4)               # -> (1, 128), (1, 1)
    return (layer1, layer2, layer3, layer4)


# ---------------------------------------------------------------------------
# Pure-JAX reference with the same bf16 casting (for a quick self-check).
# ---------------------------------------------------------------------------
def critic_ref(states, actions, params):
    B = states.shape[0]
    (w1s, w1a, b1), (w2, b2), (w3, b3), (w4, b4) = params
    xs = states.reshape(B, -1).astype(jnp.bfloat16)
    xa = actions.reshape(B, -1).astype(jnp.bfloat16)
    h1 = (jnp.dot(xs, w1s, preferred_element_type=jnp.float32)
          + jnp.dot(xa, w1a, preferred_element_type=jnp.float32))
    h1 = jnp.maximum(h1 + b1, 0.0)
    h2 = jnp.maximum(
        jnp.dot(h1.astype(jnp.bfloat16), w2, preferred_element_type=jnp.float32) + b2, 0.0)
    h3 = jnp.maximum(
        jnp.dot(h2.astype(jnp.bfloat16), w3, preferred_element_type=jnp.float32) + b3, 0.0)
    return jnp.sum(h3 * w4, axis=-1, keepdims=True) + b4


if __name__ == "__main__":
    # Small shapes consistent with the module's forward.
    batch = 8
    state_dim = 8
    action_dim = 4
    num_agents = 3

    key = jax.random.PRNGKey(0)
    k_states, k_actions, k_params = jax.random.split(key, 3)

    states = jax.random.normal(k_states, (batch, num_agents, state_dim), jnp.float32)
    actions = jax.random.normal(k_actions, (batch, num_agents, action_dim), jnp.float32)
    params = init_critic_params(k_params, state_dim, action_dim, num_agents)

    q = critic_forward(states, actions, params)
    jax.block_until_ready(q)

    q_ref = critic_ref(states, actions, params)
    assert q.shape == (batch, 1), q.shape
    assert jnp.allclose(q, q_ref, atol=1e-2, rtol=1e-2), (q, q_ref)

    print("KERNEL_OK")
</pallas_src>

<mosaic_0001>
module attributes {stable_mosaic.version = 11 : i64} {
  func.func @critic_kernel(%arg0: i32, %arg1: memref<16x24xbf16, #tpu.memory_space<vmem>>, %arg2: memref<16x12xbf16, #tpu.memory_space<vmem>>, %arg3: memref<24x512xbf16, #tpu.memory_space<vmem>>, %arg4: memref<12x512xbf16, #tpu.memory_space<vmem>>, %arg5: memref<1x512xf32, #tpu.memory_space<vmem>>, %arg6: memref<512x256xbf16, #tpu.memory_space<vmem>>, %arg7: memref<1x256xf32, #tpu.memory_space<vmem>>, %arg8: memref<256x128xbf16, #tpu.memory_space<vmem>>, %arg9: memref<1x128xf32, #tpu.memory_space<vmem>>, %arg10: memref<1x128xf32, #tpu.memory_space<vmem>>, %arg11: memref<1x1xf32, #tpu.memory_space<vmem>>, %arg12: memref<16x1xf32, #tpu.memory_space<vmem>>) attributes {dimension_semantics = [#tpu.dimension_semantics<parallel>], iteration_bounds = array<i64: 1>, scalar_prefetch = 0 : i64, scratch_operands = 0 : i64, tpu.core_type = #tpu.core_type<tc>, window_params = [{transform_indices = @transform_0, window_bounds = array<i64: 16, 24>}, {transform_indices = @transform_1, window_bounds = array<i64: 16, 12>}, {pipeline_mode = #tpu.pipeline_mode<synchronous>, transform_indices = @transform_2, window_bounds = array<i64: 24, 512>}, {pipeline_mode = #tpu.pipeline_mode<synchronous>, transform_indices = @transform_3, window_bounds = array<i64: 12, 512>}, {pipeline_mode = #tpu.pipeline_mode<synchronous>, transform_indices = @transform_4, window_bounds = array<i64: 1, 512>}, {pipeline_mode = #tpu.pipeline_mode<synchronous>, transform_indices = @transform_5, window_bounds = array<i64: 512, 256>}, {pipeline_mode = #tpu.pipeline_mode<synchronous>, transform_indices = @transform_6, window_bounds = array<i64: 1, 256>}, {pipeline_mode = #tpu.pipeline_mode<synchronous>, transform_indices = @transform_7, window_bounds = array<i64: 256, 128>}, {pipeline_mode = #tpu.pipeline_mode<synchronous>, transform_indices = @transform_8, window_bounds = array<i64: 1, 128>}, {pipeline_mode = #tpu.pipeline_mode<synchronous>, transform_indices = @transform_9, window_bounds = array<i64: 1, 128>}, {pipeline_mode = #tpu.pipeline_mode<synchronous>, transform_indices = @transform_10, window_bounds = array<i64: 1, 1>}, {transform_indices = @transform_11, window_bounds = array<i64: 16, 1>}]} {
    %c0 = arith.constant 0 : index
    %c0_0 = arith.constant 0 : index
    %0 = vector.load %arg1[%c0, %c0_0] : memref<16x24xbf16, #tpu.memory_space<vmem>>, vector<16x24xbf16>
    %c0_1 = arith.constant 0 : index
    %c0_2 = arith.constant 0 : index
    %1 = vector.load %arg3[%c0_1, %c0_2] : memref<24x512xbf16, #tpu.memory_space<vmem>>, vector<24x512xbf16>
    %cst = arith.constant dense<0.000000e+00> : vector<16x512xf32>
    %2 = tpu.matmul %0, %1, %cst {dimension_numbers = #tpu.dot_dimension_numbers<[1], [0], [0], [1], [0, 0, 1, 1], [], []>} : vector<16x24xbf16>, vector<24x512xbf16>, vector<16x512xf32> -> vector<16x512xf32>
    %c0_3 = arith.constant 0 : index
    %c0_4 = arith.constant 0 : index
    %3 = vector.load %arg2[%c0_3, %c0_4] : memref<16x12xbf16, #tpu.memory_space<vmem>>, vector<16x12xbf16>
    %c0_5 = arith.constant 0 : index
    %c0_6 = arith.constant 0 : index
    %4 = vector.load %arg4[%c0_5, %c0_6] : memref<12x512xbf16, #tpu.memory_space<vmem>>, vector<12x512xbf16>
    %cst_7 = arith.constant dense<0.000000e+00> : vector<16x512xf32>
    %5 = tpu.matmul %3, %4, %cst_7 {dimension_numbers = #tpu.dot_dimension_numbers<[1], [0], [0], [1], [0, 0, 1, 1], [], []>} : vector<16x12xbf16>, vector<12x512xbf16>, vector<16x512xf32> -> vector<16x512xf32>
    %6 = arith.addf %2, %5 : vector<16x512xf32>
    %c0_8 = arith.constant 0 : index
    %c0_9 = arith.constant 0 : index
    %7 = vector.load %arg5[%c0_8, %c0_9] : memref<1x512xf32, #tpu.memory_space<vmem>>, vector<1x512xf32>
    %8 = vector.broadcast %7 : vector<1x512xf32> to vector<16x512xf32>
    %9 = arith.addf %6, %8 : vector<16x512xf32>
    %cst_10 = arith.constant 0.000000e+00 : f32
    %10 = vector.broadcast %cst_10 : f32 to vector<16x512xf32>
    %11 = arith.maximumf %9, %10 : vector<16x512xf32>
    %12 = arith.truncf %11 : vector<16x512xf32> to vector<16x512xbf16>
    %c0_11 = arith.constant 0 : index
    %c0_12 = arith.constant 0 : index
    %13 = vector.load %arg6[%c0_11, %c0_12] : memref<512x256xbf16, #tpu.memory_space<vmem>>, vector<512x256xbf16>
    %cst_13 = arith.constant dense<0.000000e+00> : vector<16x256xf32>
    %14 = tpu.matmul %12, %13, %cst_13 {dimension_numbers = #tpu.dot_dimension_numbers<[1], [0], [0], [1], [0, 0, 1, 1], [], []>} : vector<16x512xbf16>, vector<512x256xbf16>, vector<16x256xf32> -> vector<16x256xf32>
    %c0_14 = arith.constant 0 : index
    %c0_15 = arith.constant 0 : index
    %15 = vector.load %arg7[%c0_14, %c0_15] : memref<1x256xf32, #tpu.memory_space<vmem>>, vector<1x256xf32>
    %16 = vector.broadcast %15 : vector<1x256xf32> to vector<16x256xf32>
    %17 = arith.addf %14, %16 : vector<16x256xf32>
    %cst_16 = arith.constant 0.000000e+00 : f32
    %18 = vector.broadcast %cst_16 : f32 to vector<16x256xf32>
    %19 = arith.maximumf %17, %18 : vector<16x256xf32>
    %20 = arith.truncf %19 : vector<16x256xf32> to vector<16x256xbf16>
    %c0_17 = arith.constant 0 : index
    %c0_18 = arith.constant 0 : index
    %21 = vector.load %arg8[%c0_17, %c0_18] : memref<256x128xbf16, #tpu.memory_space<vmem>>, vector<256x128xbf16>
    %cst_19 = arith.constant dense<0.000000e+00> : vector<16x128xf32>
    %22 = tpu.matmul %20, %21, %cst_19 {dimension_numbers = #tpu.dot_dimension_numbers<[1], [0], [0], [1], [0, 0, 1, 1], [], []>} : vector<16x256xbf16>, vector<256x128xbf16>, vector<16x128xf32> -> vector<16x128xf32>
    %c0_20 = arith.constant 0 : index
    %c0_21 = arith.constant 0 : index
    %23 = vector.load %arg9[%c0_20, %c0_21] : memref<1x128xf32, #tpu.memory_space<vmem>>, vector<1x128xf32>
    %24 = vector.broadcast %23 : vector<1x128xf32> to vector<16x128xf32>
    %25 = arith.addf %22, %24 : vector<16x128xf32>
    %cst_22 = arith.constant 0.000000e+00 : f32
    %26 = vector.broadcast %cst_22 : f32 to vector<16x128xf32>
    %27 = arith.maximumf %25, %26 : vector<16x128xf32>
    %c0_23 = arith.constant 0 : index
    %c0_24 = arith.constant 0 : index
    %28 = vector.load %arg10[%c0_23, %c0_24] : memref<1x128xf32, #tpu.memory_space<vmem>>, vector<1x128xf32>
    %29 = vector.broadcast %28 : vector<1x128xf32> to vector<16x128xf32>
    %30 = arith.mulf %27, %29 : vector<16x128xf32>
    %cst_25 = arith.constant dense<0.000000e+00> : vector<16xf32>
    %31 = vector.multi_reduction <add>, %30, %cst_25 [1] : vector<16x128xf32> to vector<16xf32>
    %32 = vector.shape_cast %31 : vector<16xf32> to vector<16x1xf32>
    %c0_26 = arith.constant 0 : index
    %c0_27 = arith.constant 0 : index
    %33 = vector.load %arg11[%c0_26, %c0_27] : memref<1x1xf32, #tpu.memory_space<vmem>>, vector<1x1xf32>
    %34 = vector.broadcast %33 : vector<1x1xf32> to vector<16x1xf32>
    %35 = arith.addf %32, %34 : vector<16x1xf32>
    %c0_28 = arith.constant 0 : index
    %c0_29 = arith.constant 0 : index
    %36 = vector.load %arg12[%c0_28, %c0_29] : memref<16x1xf32, #tpu.memory_space<vmem>>, vector<16x1xf32>
    tpu.vector_store %arg12[%c0_28, %c0_29], %35 {strides = array<i32>} : memref<16x1xf32, #tpu.memory_space<vmem>>, vector<16x1xf32>,
    return
  }
  func.func @transform_0(%arg0: i32) -> (i32, i32) {
    %c0_i32 = arith.constant 0 : i32
    %c0_i32_0 = arith.constant 0 : i32
    return %arg0, %c0_i32 : i32, i32
  }
  func.func @transform_1(%arg0: i32) -> (i32, i32) {
    %c0_i32 = arith.constant 0 : i32
    %c0_i32_0 = arith.constant 0 : i32
    return %arg0, %c0_i32 : i32, i32
  }
  func.func @transform_2(%arg0: i32) -> (i32, i32) {
    %c0_i32 = arith.constant 0 : i32
    %c0_i32_0 = arith.constant 0 : i32
    %c0_i32_1 = arith.constant 0 : i32
    return %c0_i32, %c0_i32_0 : i32, i32
  }
  func.func @transform_3(%arg0: i32) -> (i32, i32) {
    %c0_i32 = arith.constant 0 : i32
    %c0_i32_0 = arith.constant 0 : i32
    %c0_i32_1 = arith.constant 0 : i32
    return %c0_i32, %c0_i32_0 : i32, i32
  }
  func.func @transform_4(%arg0: i32) -> (i32, i32) {
    %c0_i32 = arith.constant 0 : i32
    %c0_i32_0 = arith.constant 0 : i32
    %c0_i32_1 = arith.constant 0 : i32
    return %c0_i32, %c0_i32_0 : i32, i32
  }
  func.func @transform_5(%arg0: i32) -> (i32, i32) {
    %c0_i32 = arith.constant 0 : i32
    %c0_i32_0 = arith.constant 0 : i32
    %c0_i32_1 = arith.constant 0 : i32
    return %c0_i32, %c0_i32_0 : i32, i32
  }
  func.func @transform_6(%arg0: i32) -> (i32, i32) {
    %c0_i32 = arith.constant 0 : i32
    %c0_i32_0 = arith.constant 0 : i32
    %c0_i32_1 = arith.constant 0 : i32
    return %c0_i32, %c0_i32_0 : i32, i32
  }
  func.func @transform_7(%arg0: i32) -> (i32, i32) {
    %c0_i32 = arith.constant 0 : i32
    %c0_i32_0 = arith.constant 0 : i32
    %c0_i32_1 = arith.constant 0 : i32
    return %c0_i32, %c0_i32_0 : i32, i32
  }
  func.func @transform_8(%arg0: i32) -> (i32, i32) {
    %c0_i32 = arith.constant 0 : i32
    %c0_i32_0 = arith.constant 0 : i32
    %c0_i32_1 = arith.constant 0 : i32
    return %c0_i32, %c0_i32_0 : i32, i32
  }
  func.func @transform_9(%arg0: i32) -> (i32, i32) {
    %c0_i32 = arith.constant 0 : i32
    %c0_i32_0 = arith.constant 0 : i32
    %c0_i32_1 = arith.constant 0 : i32
    return %c0_i32, %c0_i32_0 : i32, i32
  }
  func.func @transform_10(%arg0: i32) -> (i32, i32) {
    %c0_i32 = arith.constant 0 : i32
    %c0_i32_0 = arith.constant 0 : i32
    %c0_i32_1 = arith.constant 0 : i32
    return %c0_i32, %c0_i32_0 : i32, i32
  }
  func.func @transform_11(%arg0: i32) -> (i32, i32) {
    %c0_i32 = arith.constant 0 : i32
    %c0_i32_0 = arith.constant 0 : i32
    return %arg0, %c0_i32 : i32, i32
  }
}

</mosaic_0001>

<bundles_post_ra>
// kernel: tpu_custom_call.1
= control target key start
LH: loop header
LB: loop body
LE: loop exit
PB: predicated region body
PF: predicated region fallthrough
CT: control target
= control target key end

     0   :  { %s1769_s0 = inlined_call_operand.hbm [shape: bf16[16,24], index: 0, kind: input, shape index: {}]   ;;  %s1770_s1 = inlined_call_operand.hbm [shape: bf16[16,12], index: 1, kind: input, shape index: {}]   ;;  %s1771_s2 = inlined_call_operand.hbm [shape: bf16[24,512], index: 2, kind: input, shape index: {}]   ;;  %s1772_s3 = inlined_call_operand.hbm [shape: bf16[12,512], index: 3, kind: input, shape index: {}]   ;;  %s1773_s4 = inlined_call_operand.vmem [shape: f32[1,512], index: 4, kind: input, shape index: {}]   ;;  %s1774_s5 = inlined_call_operand.hbm [shape: bf16[512,256], index: 5, kind: input, shape index: {}]   ;;  %s1775_s6 = inlined_call_operand.vmem [shape: f32[1,256], index: 6, kind: input, shape index: {}]   ;;  %s1776_s7 = inlined_call_operand.hbm [shape: bf16[256,128], index: 7, kind: input, shape index: {}]   ;;  %s1777_s8 = inlined_call_operand.vmem [shape: f32[1,128], index: 8, kind: input, shape index: {}]   ;;  %s1778_s9 = inlined_call_operand.vmem [shape: f32[1,128], index: 9, kind: input, shape index: {}]   ;;  %s1779_s10 = inlined_call_operand.<no memory space> [shape: f32[1,1], index: 10, kind: input, shape index: {}]   ;;  %s1780_s11 = inlined_call_operand.vmem [shape: f32[16,1], index: 11, kind: output, shape index: {}]  }
   0x1   :  { %v16_v0 = vstv %s1779_s10 }
   0x2   :  { %17 = vst [vmem:[#allocation2] sm:$0x1] %v16_v0 }
   0x3   :  { %18 = vsyncpa [#allocation4], 0 }
   0x4   :  { %19 = vsyncpa [#allocation6], 0 }
   0x5   :  { %20 = vsyncpa [#allocation9], 0 }
   0x6   :  { %21 = vsyncpa [#allocation12], 0  ;;  %s1566_s19 = smov [#allocation5]   ;;  %s1426_s23 = scalar_lea.hbm %s1770_s1, 128 }
   0x7   :  { %s39_s20 = sshll.u32 %s1566_s19, 4  ;;  %p1427_p0 = scmp.ne.s32.totalorder %s1770_s1, %s1426_s23  ;;  %s40_s20 = int_to_ptr.vmem [resolvable:$true] %s39_s20 }
   0x8   :  { %p1430_p1 = scmp.lt.u32.totalorder %s1426_s23, %s1770_s1 }
   0xa   :  { %p1432_p2 = pnand %p1430_p1, %p1427_p0 }
   0xc   :  { %1435 = shalt.err (!%p1432_p2)
}
   0xd   :  { %s1436_s10 = scalar_lea.vmem %s40_s20, 128  ;;  %p1441_p4 = scmp.lt.s32.totalorder %s40_s20, %s40_s20 }
   0xe   :  { %p1437_p3 = scmp.ne.s32.totalorder %s40_s20, %s1436_s10  ;;  %p1442_p5 = scmp.lt.s32.totalorder %s1436_s10, %s1436_s10 }
  0x10   :  { %p1443_p6 = por %p1442_p5, %p1441_p4 }
  0x12   :  { %p1444_p7 = pnand %p1443_p6, %p1437_p3 }
  0x14   :  { %1447 = shalt.err (!%p1444_p7)
}
  0x15   :  { %s1567_s28 = smov 64   ;;  %s1568_s29 = smov 4  }
  0x16   :  { %45 = dma.hbm_to_vmem [thread:$0]  %s1770_s1, 128, %s40_s20, [#allocation6], %s1567_s28, %s1567_s28, %s1568_s29  }
  0x17   :  { %s1569_s13 = smov [#allocation8]   ;;  %s1570_s15 = smov [#allocation3]  }
  0x18   :  { %s63_s14 = sshll.u32 %s1569_s13, 4  ;;  %s27_s16 = sshll.u32 %s1570_s15, 4  ;;  %s64_s14 = int_to_ptr.vmem [resolvable:$true] %s63_s14  ;;  %s28_s16 = int_to_ptr.vmem [resolvable:$true] %s27_s16 }
  0x19   :  { %s1448_s19 = scalar_lea.hbm %s1772_s3, 512 }
  0x1a   :  { %p1449_p8 = scmp.ne.s32.totalorder %s1772_s3, %s1448_s19  ;;  %p1452_p9 = scmp.lt.u32.totalorder %s1448_s19, %s1772_s3 }
  0x1c   :  { %p1454_p10 = pnand %p1452_p9, %p1449_p8 }
  0x1e   :  { %1457 = shalt.err (!%p1454_p10)
}
  0x1f   :  { %s1458_s1 = scalar_lea.vmem %s64_s14, 512  ;;  %p1463_p12 = scmp.lt.s32.totalorder %s64_s14, %s64_s14 }
  0x20   :  { %p1459_p11 = scmp.ne.s32.totalorder %s64_s14, %s1458_s1  ;;  %p1464_p13 = scmp.lt.s32.totalorder %s1458_s1, %s1458_s1 }
  0x22   :  { %p1465_p0 = por %p1464_p13, %p1463_p12 }
  0x24   :  { %p1466_p1 = pnand %p1465_p0, %p1459_p11 }
  0x26   :  { %1469 = shalt.err (!%p1466_p1)
}
  0x27   :  { %s1571_s20 = smov 256   ;;  %s1572_s25 = smov 16  }
  0x28   :  { %69 = dma.hbm_to_vmem [thread:$0]  %s1772_s3, 512, %s64_s14, [#allocation9], %s1571_s20, %s1571_s20, %s1572_s25  }
  0x29   :  { %s1470_s12 = scalar_lea.hbm %s1769_s0, 128 }
  0x2a   :  { %p1471_p2 = scmp.ne.s32.totalorder %s1769_s0, %s1470_s12  ;;  %p1474_p3 = scmp.lt.u32.totalorder %s1470_s12, %s1769_s0 }
  0x2c   :  { %p1476_p4 = pnand %p1474_p3, %p1471_p2 }
  0x2e   :  { %1479 = shalt.err (!%p1476_p4)
}
  0x2f   :  { %s1480_s19 = scalar_lea.vmem %s28_s16, 128  ;;  %p1485_p6 = scmp.lt.s32.totalorder %s28_s16, %s28_s16 }
  0x30   :  { %p1481_p5 = scmp.ne.s32.totalorder %s28_s16, %s1480_s19  ;;  %p1486_p7 = scmp.lt.s32.totalorder %s1480_s19, %s1480_s19 }
  0x32   :  { %p1487_p8 = por %p1486_p7, %p1485_p6 }
  0x34   :  { %p1488_p9 = pnand %p1487_p8, %p1481_p5 }
  0x36   :  { %1491 = shalt.err (!%p1488_p9)
}
  0x37   :  { %33 = dma.hbm_to_vmem [thread:$0]  %s1769_s0, 128, %s28_s16, [#allocation4], %s1567_s28, %s1567_s28, %s1568_s29  }
  0x38   :  { %s1573_s21 = smov [#allocation7]   ;;  %s1574_s23 = smov [#allocation10]  }
  0x39   :  { %s51_s22 = sshll.u32 %s1573_s21, 4  ;;  %s77_s24 = sshll.u32 %s1574_s23, 4  ;;  %s52_s22 = int_to_ptr.vmem [resolvable:$true] %s51_s22  ;;  %s78_s24 = int_to_ptr.vmem [resolvable:$true] %s77_s24 }
  0x3a   :  { %s1492_s27 = scalar_lea.hbm %s1771_s2, 768 }
  0x3b   :  { %p1493_p10 = scmp.ne.s32.totalorder %s1771_s2, %s1492_s27  ;;  %p1496_p11 = scmp.lt.u32.totalorder %s1492_s27, %s1771_s2 }
  0x3d   :  { %p1498_p12 = pnand %p1496_p11, %p1493_p10 }
  0x3f   :  { %1501 = shalt.err (!%p1498_p12)
}
  0x40   :  { %s1502_s0 = scalar_lea.vmem %s52_s22, 768  ;;  %p1507_p0 = scmp.lt.s32.totalorder %s52_s22, %s52_s22 }
  0x41   :  { %p1503_p13 = scmp.ne.s32.totalorder %s52_s22, %s1502_s0  ;;  %p1508_p1 = scmp.lt.s32.totalorder %s1502_s0, %s1502_s0 }
  0x43   :  { %p1509_p2 = por %p1508_p1, %p1507_p0 }
  0x45   :  { %p1510_p3 = pnand %p1509_p2, %p1503_p13 }
  0x47   :  { %1513 = shalt.err (!%p1510_p3)
}
  0x48   :  { %57 = dma.hbm_to_vmem [thread:$0]  %s1771_s2, 768, %s52_s22, [#allocation6], %s1571_s20, %s1571_s20, %s1572_s25  }
  0x49   :  { %s1514_s19 = scalar_lea.hbm %s1774_s5, 8192 }
  0x4a   :  { %p1515_p4 = scmp.ne.s32.totalorder %s1774_s5, %s1514_s19  ;;  %p1518_p5 = scmp.lt.u32.totalorder %s1514_s19, %s1774_s5 }
  0x4c   :  { %p1520_p6 = pnand %p1518_p5, %p1515_p4 }
  0x4e   :  { %1523 = shalt.err (!%p1520_p6)
}
  0x4f   :  { %s1524_s1 = scalar_lea.vmem %s78_s24, 8192  ;;  %p1529_p8 = scmp.lt.s32.totalorder %s78_s24, %s78_s24 }
  0x50   :  { %p1525_p7 = scmp.ne.s32.totalorder %s78_s24, %s1524_s1  ;;  %p1530_p9 = scmp.lt.s32.totalorder %s1524_s1, %s1524_s1 }
  0x52   :  { %p1531_p10 = por %p1530_p9, %p1529_p8 }
  0x54   :  { %p1532_p11 = pnand %p1531_p10, %p1525_p7 }
  0x56   :  { %1535 = shalt.err (!%p1532_p11)
}
  0x57   :  { %s1575_s2 = smov 128   ;;  %s1576_s20 = smov 8  }
  0x58   :  { %83 = dma.hbm_to_vmem [thread:$0]  %s1774_s5, 8192, %s78_s24, [#allocation9], %s1575_s2, %s1575_s2, %s1576_s20  }
  0x59   :  { %s1577_s26 = smov [#allocation11]   ;;  %s1536_s12 = scalar_lea.hbm %s1776_s7, 2048 }
  0x5a   :  { %s91_s27 = sshll.u32 %s1577_s26, 4  ;;  %p1537_p12 = scmp.ne.s32.totalorder %s1776_s7, %s1536_s12  ;;  %s92_s27 = int_to_ptr.vmem [resolvable:$true] %s91_s27 }
  0x5b   :  { %p1540_p13 = scmp.lt.u32.totalorder %s1536_s12, %s1776_s7 }
  0x5d   :  { %p1542_p0 = pnand %p1540_p13, %p1537_p12 }
  0x5f   :  { %1545 = shalt.err (!%p1542_p0)
}
  0x60   :  { %s1546_s17 = scalar_lea.vmem %s92_s27, 2048  ;;  %p1551_p2 = scmp.lt.s32.totalorder %s92_s27, %s92_s27 }
  0x61   :  { %p1547_p1 = scmp.ne.s32.totalorder %s92_s27, %s1546_s17  ;;  %p1552_p3 = scmp.lt.s32.totalorder %s1546_s17, %s1546_s17 }
  0x63   :  { %p1553_p4 = por %p1552_p3, %p1551_p2 }
  0x65   :  { %p1554_p5 = pnand %p1553_p4, %p1547_p1 }
  0x67   :  { %1557 = shalt.err (!%p1554_p5)
}
  0x68   :  { %97 = dma.hbm_to_vmem [thread:$0]  %s1776_s7, 2048, %s92_s27, [#allocation12], %s1567_s28, %s1567_s28, %s1568_s29  }
  0x69   :  { %1558 = dma.done.wait [#allocation4], 128  }
  0x6a   :  { %1559 = vsyncadd [#allocation4], 4294967168 }
  0x6b   :  { %1560 = dma.done.wait [#allocation6], 896  }
  0x6c   :  { %1561 = vsyncadd [#allocation6], 4294966400 }
  0x6d   :  { %1562 = dma.done.wait [#allocation9], 8704  }
  0x6e   :  { %1563 = vsyncadd [#allocation9], 4294958592 }
  0x6f   :  { %1564 = dma.done.wait [#allocation12], 2048  }
  0x70   :  { %1565 = vsyncadd [#allocation12], 4294965248  ;;  %v1578_v1 = vmov 0   ;;  %vm162_vm0 = vcmask 1045504   ;;  %v1299_v4 = vld [vmem:[#allocation5] sm:$0xff]   ;;  %vm158_vm1 = vcmask 97280  }
  0x71   :  { %207 = vmatprep.mubr.bf16.mxu0 %v1578_v1  ;;  %v1296_v2 = vld [vmem:[#allocation8 + $0x4] ss:$16 sps:$4 sm:$0x3f]   ;;  %v1298_v3 = vld [vmem:[#allocation8] ss:$16 sps:$4 sm:$0x3f]  }
  0x72   :  { %1145 = vmatprep.subr.msk.bf16.mxu0 %vm162_vm0, %v1296_v2  ;;  %v164_v5 = vsel %vm162_vm0, %v1298_v3, 0  ;;  %v1300_v6 = vld [vmem:[#allocation8 + $0xc] ss:$16 sps:$4 sm:$0x3f]   ;;  %v1305_v8 = vld [vmem:[#allocation7 + $0x4] ss:$16 sps:$4 sm:$0xff]  }
  0x73   :  { %176 = vmatpush1.bf16.msra.mxu0 %v164_v5  ;;  %v1302_v7 = vld [vmem:[#allocation8 + $0x8] ss:$16 sps:$4 sm:$0x3f]   ;;  %v1314_v10 = vld [vmem:[#allocation10 + $0x4] ss:$8 sps:$4 sm:$0xff]   ;;  %v129_v12 = vld [vmem:[#allocation7 + $0x20] sm:$0xff] }
  0x74   :  { %1147 = vmatprep.subr.msk.bf16.mxu0 %vm162_vm0, %v1300_v6  ;;  %v170_v9 = vsel %vm162_vm0, %v1302_v7, 0  ;;  %v1316_v11 = vld [vmem:[#allocation10] ss:$8 sps:$4 sm:$0xff]   ;;  %837 = vmatprep.subr.bf16.mxu1 %v1314_v10  ;;  %v1317_v13 = vld [vmem:[#allocation10 + $0x14] ss:$8 sps:$4 sm:$0xff]   ;;  %v1155_v16 = vcombine.high %v129_v12, %v129_v12  ;;  %v1154_v17 = vcombine.low %v129_v12, %v129_v12  ;;  %vm300_vm2 = vcmask 1043456  }
  0x75   :  { %838 = vmatpush1.bf16.msra.mxu1 %v1316_v11  ;;  %v1319_v14 = vld [vmem:[#allocation10 + $0x10] ss:$8 sps:$4 sm:$0xff]   ;;  %v1320_v18 = vld [vmem:[#allocation10 + $0x24] ss:$8 sps:$4 sm:$0xff]   ;;  %v1325_v19 = vld [vmem:[#allocation10 + $0x20] ss:$8 sps:$4 sm:$0xff]  }
  0x76   :  { %1146 = vmatmul.mubr.msk.bf16.vlgmr.msra.gmra.mrb[0].mxu0 %vm158_vm1, %v1299_v4  ;;  %v1303_v15 = vld [vmem:[#allocation7] ss:$16 sps:$4 sm:$0xff]   ;;  %839 = vmatprep.subr.bf16.mxu1 %v1317_v13  ;;  %v1326_v20 = vld [vmem:[#allocation10 + $0x34] ss:$8 sps:$4 sm:$0xff]   ;;  %v302_v21 = vsel %vm300_vm2, %v1154_v17, 0  ;;  %vm296_vm3 = vcmask 195584  }
  0x77   :  { %219 = vmatpush1.bf16.msra.mxu0 %v170_v9  ;;  %250 = vmatprep.mubr.bf16.mxu0 %v1578_v1  ;;  %v1311_v22 = vld [vmem:[#allocation7 + $0xc] ss:$16 sps:$4 sm:$0xff]   ;;  %v1308_v23 = vld [vmem:[#allocation3] sm:$0xff]   ;;  %v1331_v25 = vld [vmem:[#allocation10 + $0x30] ss:$8 sps:$4 sm:$0xff]   ;;  %vm1129_vm4 = vcmask 7168  }
  0x78   :  { %313 = vmatprep.subr.bf16.mxu0 %v1305_v8  ;;  %v130_v24 = vld [vmem:[#allocation7 + $0x28] sm:$0xff]  ;;  %v1332_v29 = vld [vmem:[#allocation10 + $0x44] ss:$8 sps:$4 sm:$0xff]   ;;  %v1337_v30 = vld [vmem:[#allocation10 + $0x40] ss:$8 sps:$4 sm:$0xff]  }
  0x79   :  { %840 = vmatpush1.bf16.msra.mxu1 %v1319_v14  ;;  %v1309_v26 = vld [vmem:[#allocation7 + $0x8] ss:$16 sps:$4 sm:$0xff]   ;;  %v1157_v27 = vcombine.high %v130_v24, %v130_v24  ;;  %v1156_v28 = vcombine.low %v130_v24, %v130_v24  ;;  %v1338_v31 = vld [vmem:[#allocation10 + $0x54] ss:$8 sps:$4 sm:$0xff]   ;;  %v1324_v33 = vld [vmem:[#allocation10 + $0x104] ss:$8 sps:$4 sm:$0xff]  }
  0x7a   :  { %841 = vmatprep.subr.bf16.mxu1 %v1320_v18  ;;  %v1343_v34 = vld [vmem:[#allocation10 + $0x50] ss:$8 sps:$4 sm:$0xff]   ;;  %v1322_v35 = vld [vmem:[#allocation10 + $0x100] ss:$8 sps:$4 sm:$0xff]   ;;  %v1344_v36 = vld [vmem:[#allocation10 + $0x64] ss:$8 sps:$4 sm:$0xff]  }
  0x7b   :  { %v308_v32 = vsel %vm300_vm2, %v1156_v28, 0  ;;  %v1330_v37 = vld [vmem:[#allocation10 + $0x114] ss:$8 sps:$4 sm:$0xff]   ;;  %v1328_v38 = vld [vmem:[#allocation10 + $0x110] ss:$8 sps:$4 sm:$0xff]  }
  0x7c   :  { %v1349_v39 = vld [vmem:[#allocation10 + $0x60] ss:$8 sps:$4 sm:$0xff]   ;;  %v1350_v40 = vld [vmem:[#allocation10 + $0x74] ss:$8 sps:$4 sm:$0xff]   ;;  %v1336_v41 = vld [vmem:[#allocation10 + $0x124] ss:$8 sps:$4 sm:$0xff]  }
  0x7d   :  { %842 = vmatpush1.bf16.msra.mxu1 %v1325_v19  ;;  %v1355_v42 = vld [vmem:[#allocation10 + $0x70] ss:$8 sps:$4 sm:$0xff]   ;;  %v1334_v43 = vld [vmem:[#allocation10 + $0x120] ss:$8 sps:$4 sm:$0xff]   ;;  %v1356_v44 = vld [vmem:[#allocation10 + $0x84] ss:$8 sps:$4 sm:$0xff]  }
  0x7e   :  { %1148 = vmatmul.mubr.msk.bf16.vlgmr.msra.gmra.mrb[4].mxu0 %vm158_vm1, %v1299_v4  ;;  %843 = vmatprep.subr.bf16.mxu1 %v1326_v20  ;;  %v1342_v45 = vld [vmem:[#allocation10 + $0x134] ss:$8 sps:$4 sm:$0xff]   ;;  %v1340_v46 = vld [vmem:[#allocation10 + $0x130] ss:$8 sps:$4 sm:$0xff]   ;;  %v1348_v47 = vld [vmem:[#allocation10 + $0x144] ss:$8 sps:$4 sm:$0xff]  }
  0x7f   :  { %314 = vmatpush1.bf16.msra.mxu0 %v1303_v15  ;;  %345 = vmatprep.mubr.bf16.mxu0 %v1578_v1  ;;  %v1361_v48 = vld [vmem:[#allocation10 + $0x80] ss:$8 sps:$4 sm:$0xff]   ;;  %v1362_v49 = vld [vmem:[#allocation10 + $0x94] ss:$8 sps:$4 sm:$0xff]   ;;  %v1367_v50 = vld [vmem:[#allocation10 + $0x90] ss:$8 sps:$4 sm:$0xff]  }
  0x80   :  { %1158 = vmatprep.subr.msk.bf16.mxu0 %vm300_vm2, %v1155_v16  ;;  %v1346_v51 = vld [vmem:[#allocation10 + $0x140] ss:$8 sps:$4 sm:$0xff]   ;;  %v1368_v52 = vld [vmem:[#allocation10 + $0xa4] ss:$8 sps:$4 sm:$0xff]   ;;  %v1354_v53 = vld [vmem:[#allocation10 + $0x154] ss:$8 sps:$4 sm:$0xff]  }
  0x81   :  { %844 = vmatpush1.bf16.msra.mxu1 %v1331_v25  ;;  %v1373_v54 = vld [vmem:[#allocation10 + $0xa0] ss:$8 sps:$4 sm:$0xff]   ;;  %v1352_v55 = vld [vmem:[#allocation10 + $0x150] ss:$8 sps:$4 sm:$0xff]   ;;  %v1374_v56 = vld [vmem:[#allocation10 + $0xb4] ss:$8 sps:$4 sm:$0xff]  }
  0x82   :  { %845 = vmatprep.subr.bf16.mxu1 %v1332_v29  ;;  %v1360_v57 = vld [vmem:[#allocation10 + $0x164] ss:$8 sps:$4 sm:$0xff]   ;;  %v1379_v58 = vld [vmem:[#allocation10 + $0xb0] ss:$8 sps:$4 sm:$0xff]   ;;  %v1358_v59 = vld [vmem:[#allocation10 + $0x160] ss:$8 sps:$4 sm:$0xff]  }
  0x83   :  { %316 = vmatpush1.bf16.msra.mxu0 %v302_v21  ;;  %v1380_v60 = vld [vmem:[#allocation10 + $0xc4] ss:$8 sps:$4 sm:$0xff]   ;;  %v1366_v61 = vld [vmem:[#allocation10 + $0x174] ss:$8 sps:$4 sm:$0xff]   ;;  %v1385_v62 = vld [vmem:[#allocation10 + $0xc0] ss:$8 sps:$4 sm:$0xff]  }
  0x84   :  { %356 = vmatprep.subr.bf16.mxu0 %v1311_v22  ;;  %v1364_v63 = vld [vmem:[#allocation10 + $0x170] ss:$8 sps:$4 sm:$0xff]   ;;  %v1386_v0 = vld [vmem:[#allocation10 + $0xd4] ss:$8 sps:$4 sm:$0xff]   ;;  %v1370_v2 = vld [vmem:[#allocation10 + $0x180] ss:$8 sps:$4 sm:$0xff]  }
  0x85   :  { %846 = vmatpush1.bf16.msra.mxu1 %v1337_v30  ;;  %v1378_v3 = vld [vmem:[#allocation10 + $0x194] ss:$8 sps:$4 sm:$0xff]   ;;  %v1376_v4 = vld [vmem:[#allocation10 + $0x190] ss:$8 sps:$4 sm:$0xff]   ;;  %v1384_v5 = vld [vmem:[#allocation10 + $0x1a4] ss:$8 sps:$4 sm:$0xff]  }
  0x86   :  { %1159 = vmatmul.mubr.msk.bf16.vlgmr.msra.gmra.mrb[0].mxu0 %vm296_vm3, %v1308_v23  ;;  %847 = vmatprep.subr.bf16.mxu1 %v1338_v31  ;;  %v1382_v6 = vld [vmem:[#allocation10 + $0x1a0] ss:$8 sps:$4 sm:$0xff]   ;;  %v1390_v7 = vld [vmem:[#allocation10 + $0x1b4] ss:$8 sps:$4 sm:$0xff]   ;;  %v1388_v8 = vld [vmem:[#allocation10 + $0x1b0] ss:$8 sps:$4 sm:$0xff]  }
  0x87   :  { %357 = vmatpush1.bf16.msra.mxu0 %v1309_v26  ;;  %388 = vmatprep.mubr.bf16.mxu0 %v1578_v1  ;;  %v1372_v1 = vld [vmem:[#allocation10 + $0x184] ss:$8 sps:$4 sm:$0xff]   ;;  %v1391_v9 = vld [vmem:[#allocation10 + $0xd0] ss:$8 sps:$4 sm:$0xff]   ;;  %v1394_v12 = vld [vmem:[#allocation10 + $0x1c0] ss:$8 sps:$4 sm:$0xff]  }
  0x88   :  { %1160 = vmatprep.subr.msk.bf16.mxu0 %vm300_vm2, %v1157_v27  ;;  %v1392_v10 = vld [vmem:[#allocation10 + $0xe4] ss:$8 sps:$4 sm:$0xff]   ;;  %v1397_v13 = vld [vmem:[#allocation10 + $0xe0] ss:$8 sps:$4 sm:$0xff]   ;;  %v1398_v14 = vld [vmem:[#allocation10 + $0xf4] ss:$8 sps:$4 sm:$0xff]  }
  0x89   :  { %848 = vmatpush1.bf16.msra.mxu1 %v1343_v34  ;;  %v1396_v11 = vld [vmem:[#allocation10 + $0x1c4] ss:$8 sps:$4 sm:$0xff]   ;;  %v1402_v15 = vld [vmem:[#allocation10 + $0x1d4] ss:$8 sps:$4 sm:$0xff]   ;;  %v1400_v16 = vld [vmem:[#allocation10 + $0x1d0] ss:$8 sps:$4 sm:$0xff]  }
  0x8a   :  { %849 = vmatprep.subr.bf16.mxu1 %v1344_v36  ;;  %v1403_v17 = vld [vmem:[#allocation10 + $0xf0] ss:$8 sps:$4 sm:$0xff]   ;;  %v1406_v18 = vld [vmem:[#allocation10 + $0x1e4] ss:$8 sps:$4 sm:$0xff]   ;;  %v1404_v19 = vld [vmem:[#allocation10 + $0x1e0] ss:$8 sps:$4 sm:$0xff]  }
  0x8b   :  { %359 = vmatpush1.bf16.msra.mxu0 %v308_v32  ;;  %v1409_v20 = vld [vmem:[#allocation10 + $0x1f4] ss:$8 sps:$4 sm:$0xff]   ;;  %v1407_v21 = vld [vmem:[#allocation10 + $0x1f0] ss:$8 sps:$4 sm:$0xff]   ;;  %v1410_v22 = vld [vmem:[#allocation11 + $0x40] sm:$0xff]  }
  0x8c   :  { %880 = vmatprep.subr.bf16.mxu0 %v1324_v33  ;;  %v399_v26 = vld [vmem:[%s1773_s4] sm:$0xf] }
  0x8d   :  { %850 = vmatpush1.bf16.msra.mxu1 %v1349_v39 }
  0x8e   :  { %1161 = vmatmul.mubr.msk.bf16.vlgmr.msra.gmra.mrb[4].mxu0 %vm296_vm3, %v1308_v23  ;;  %851 = vmatprep.subr.bf16.mxu1 %v1350_v40  ;;  %v401_v23 = vlaneseq }
  0x8f   :  { %881 = vmatpush1.bf16.msra.mxu0 %v1322_v35 }
  0x90   :  { %882 = vmatprep.subr.bf16.mxu0 %v1330_v37  ;;  %v1737_v24 = vshrl.u32 %v401_v23, 7 }
  0x91   :  { %852 = vmatpush1.bf16.msra.mxu1 %v1355_v42 }
  0x92   :  { %853 = vmatprep.subr.bf16.mxu1 %v1356_v44  ;;  %v403_v25 = vsub.s32 0, %v1737_v24  ;;  %v407_v27 = vsub.s32 1, %v1737_v24  ;;  %v411_v33 = vsub.s32 2, %v1737_v24  ;;  %v415_v36 = vsub.s32 3, %v1737_v24 }
  0x93   :  { %883 = vmatpush1.bf16.msra.mxu0 %v1328_v38 }
  0x94   :  { %884 = vmatprep.subr.bf16.mxu0 %v1336_v41  ;;  %v404_v28 = vrot.slane %v399_v26, %v403_v25  ;;  %v408_v29 = vrot.slane %v399_v26, %v407_v27  ;;  %v412_v42 = vrot.slane %v399_v26, %v411_v33 }
  0x95   :  { %854 = vmatpush1.bf16.msra.mxu1 %v1361_v48 }
  0x96   :  { %855 = vmatprep.subr.bf16.mxu1 %v1362_v49  ;;  %v1411_v49 = vld [vmem:[#allocation11] sm:$0xff]  }
  0x97   :  { %885 = vmatpush1.bf16.msra.mxu0 %v1334_v43 }
  0x98   :  { %886 = vmatprep.subr.bf16.mxu0 %v1342_v45  ;;  %v416_v45 = vrot.slane %v399_v26, %v415_v36 }
  0x99   :  { %856 = vmatpush1.bf16.msra.mxu1 %v1367_v50 }
  0x9a   :  { %857 = vmatprep.subr.bf16.mxu1 %v1368_v52  ;;  %v1412_v52 = vld [vmem:[#allocation11 + $0x48] sm:$0xff]  }
  0x9b   :  { %887 = vmatpush1.bf16.msra.mxu0 %v1340_v46 }
  0x9c   :  { %888 = vmatprep.subr.bf16.mxu0 %v1348_v47 }
  0x9d   :  { %858 = vmatpush1.bf16.msra.mxu1 %v1373_v54 }
  0x9e   :  { %859 = vmatprep.subr.bf16.mxu1 %v1374_v56 }
  0x9f   :  { %889 = vmatpush1.bf16.msra.mxu0 %v1346_v51 }
  0xa0   :  { %890 = vmatprep.subr.bf16.mxu0 %v1354_v53 }
  0xa1   :  { %860 = vmatpush1.bf16.msra.mxu1 %v1379_v58  ;;  %v1413_v58 = vld [vmem:[#allocation11 + $0x8] sm:$0xff]  }
  0xa2   :  { %861 = vmatprep.subr.bf16.mxu1 %v1380_v60 }
  0xa3   :  { %891 = vmatpush1.bf16.msra.mxu0 %v1352_v55 }
  0xa4   :  { %892 = vmatprep.subr.bf16.mxu0 %v1360_v57 }
  0xa5   :  { %862 = vmatpush1.bf16.msra.mxu1 %v1385_v62 }
  0xa6   :  { %863 = vmatprep.subr.bf16.mxu1 %v1386_v0 }
  0xa7   :  { %893 = vmatpush1.bf16.msra.mxu0 %v1358_v59 }
  0xa8   :  { %894 = vmatprep.subr.bf16.mxu0 %v1366_v61  ;;  %v1414_v61 = vld [vmem:[#allocation11 + $0x50] sm:$0xff]  }
  0xa9   :  { %864 = vmatpush1.bf16.msra.mxu1 %v1391_v9  ;;  %v1422_v9 = vld [vmem:[#allocation11 + $0x70] sm:$0xff]  }
  0xaa   :  { %865 = vmatprep.subr.bf16.mxu1 %v1392_v10  ;;  %v1423_v10 = vld [vmem:[#allocation11 + $0x30] sm:$0xff]  }
  0xab   :  { %895 = vmatpush1.bf16.msra.mxu0 %v1364_v63 }
  0xac   :  { %896 = vmatprep.subr.bf16.mxu0 %v1372_v1 }
  0xad   :  { %866 = vmatpush1.bf16.msra.mxu1 %v1397_v13  ;;  %v505_v13 = vld [vmem:[%s1775_s6] sm:$0x3] }
  0xae   :  { %867 = vmatprep.subr.bf16.mxu1 %v1398_v14  ;;  %v510_v14 = vrot.slane %v505_v13, %v403_v25 }
  0xaf   :  { %897 = vmatpush1.bf16.msra.mxu0 %v1370_v2  ;;  %v1415_v2 = vld [vmem:[#allocation11 + $0x10] sm:$0xff]  }
  0xb0   :  { %898 = vmatprep.subr.bf16.mxu0 %v1378_v3  ;;  %v1416_v3 = vld [vmem:[#allocation11 + $0x58] sm:$0xff]  }
  0xb1   :  { %868 = vmatpush1.bf16.msra.mxu1 %v1403_v17 }
  0xb2   :  { %1245 = vmatprep.subr.bf16.mxu1 %v1410_v22 }
  0xb3   :  { %899 = vmatpush1.bf16.msra.mxu0 %v1376_v4  ;;  %v1417_v4 = vld [vmem:[#allocation11 + $0x18] sm:$0xff]  }
  0xb4   :  { %900 = vmatprep.subr.bf16.mxu0 %v1384_v5  ;;  %v1418_v5 = vld [vmem:[#allocation11 + $0x60] sm:$0xff]  }
  0xb7   :  { %901 = vmatpush1.bf16.msra.mxu0 %v1382_v6  ;;  %v1419_v6 = vld [vmem:[#allocation11 + $0x20] sm:$0xff]  }
  0xb8   :  { %902 = vmatprep.subr.bf16.mxu0 %v1390_v7  ;;  %v1420_v7 = vld [vmem:[#allocation11 + $0x68] sm:$0xff]  }
  0xbb   :  { %903 = vmatpush1.bf16.msra.mxu0 %v1388_v8  ;;  %v1421_v8 = vld [vmem:[#allocation11 + $0x28] sm:$0xff]  }
  0xbc   :  { %904 = vmatprep.subr.bf16.mxu0 %v1396_v11  ;;  %v1424_v11 = vld [vmem:[#allocation11 + $0x78] sm:$0xff]  }
  0xbf   :  { %905 = vmatpush1.bf16.msra.mxu0 %v1394_v12  ;;  %v1425_v12 = vld [vmem:[#allocation11 + $0x38] sm:$0xff]  }
  0xc0   :  { %906 = vmatprep.subr.bf16.mxu0 %v1402_v15 }
  0xc3   :  { %907 = vmatpush1.bf16.msra.mxu0 %v1400_v16 }
  0xc4   :  { %908 = vmatprep.subr.bf16.mxu0 %v1406_v18 }
  0xc7   :  { %909 = vmatpush1.bf16.msra.mxu0 %v1404_v19 }
  0xc8   :  { %910 = vmatprep.subr.bf16.mxu0 %v1409_v20 }
  0xcb   :  { %911 = vmatpush1.bf16.msra.mxu0 %v1407_v21  ;;  %v514_v21 = vrot.slane %v505_v13, %v407_v27 }
 0x159   :  { %v347_v30 = vpop.f32.mrb[0].mxu0 }
 0x15a   :  { %v421_v31 = vadd.f32 %v404_v28, %v347_v30  ;;  %v349_v32 = vpop.f32.mrb[1].mxu0 }
 0x15b   :  { %v422_v34 = vadd.f32 %v408_v29, %v349_v32  ;;  %v351_v35 = vpop.f32.mrb[2].mxu0 }
 0x15c   :  { %v425_v37 = vadd.f32 %v404_v28, %v351_v35  ;;  %v353_v38 = vpop.f32.mrb[3].mxu0  ;;  %v429_v40 = vmax.f32 %v421_v31, 0.0 }
 0x15d   :  { %v426_v39 = vadd.f32 %v408_v29, %v353_v38  ;;  %v430_v43 = vmax.f32 %v422_v34, 0.0 }
 0x15e   :  { %v433_v41 = vmax.f32 %v425_v37, 0.0 }
 0x15f   :  { %v434_v44 = vmax.f32 %v426_v39, 0.0 }
 0x160   :  { %v437_v46 = vpack.c.bf16 %v433_v41, %v429_v40  ;;  %v1226_v40 = vld [vmem:[%s1777_s8] ss:$0 sm:$0xff] }
 0x161   :  { %v390_v47 = vpop.f32.mrb[4].mxu0  ;;  %v438_v48 = vpack.c.bf16 %v434_v44, %v430_v43 }
 0x162   :  { %v423_v50 = vadd.f32 %v412_v42, %v390_v47  ;;  %v392_v51 = vpop.f32.mrb[5].mxu0 }
 0x163   :  { %v424_v53 = vadd.f32 %v416_v45, %v392_v51  ;;  %v394_v54 = vpop.f32.mrb[6].mxu0  ;;  %869 = vmatprep.mubr.bf16.mxu1 %v438_v48 }
 0x164   :  { %v427_v55 = vadd.f32 %v412_v42, %v394_v54  ;;  %v396_v56 = vpop.f32.mrb[7].mxu0  ;;  %870 = vmatmul.mubr.bf16.vlgmr.msra.gmra.mrb[0].mxu1 %v437_v46  ;;  %v431_v59 = vmax.f32 %v423_v50, 0.0  ;;  %v1243_v46 = vld [vmem:[%s1778_s9] ss:$0 sm:$0xff] }
 0x165   :  { %v428_v57 = vadd.f32 %v416_v45, %v396_v56  ;;  %1246 = vmatpush3.bf16.msra.mxu1 %v1411_v49  ;;  %v432_v62 = vmax.f32 %v424_v53, 0.0 }
 0x166   :  { %v435_v60 = vmax.f32 %v427_v55, 0.0  ;;  %1247 = vmatprep.subr.bf16.mxu1 %v1412_v52  ;;  %v1244_v52 = vld [vmem:[#allocation2] ss:$0 sm:$0xff] }
 0x167   :  { %v436_v63 = vmax.f32 %v428_v57, 0.0 }
 0x168   :  { %v439_v0 = vpack.c.bf16 %v435_v60, %v431_v59 }
 0x169   :  { %v440_v1 = vpack.c.bf16 %v436_v63, %v432_v62  ;;  %1248 = vmatpush3.bf16.msra.mxu1 %v1413_v58 }
 0x16a   :  { %1249 = vmatprep.subr.bf16.mxu1 %v1414_v61 }
 0x16b   :  { %912 = vmatprep.mubr.bf16.mxu0 %v440_v1 }
 0x16c   :  { %913 = vmatmul.mubr.bf16.vlgmr.msra.gmra.mrb[8].mxu0 %v439_v0 }
 0x16d   :  { %1250 = vmatpush3.bf16.msra.mxu1 %v1415_v2 }
 0x16e   :  { %1251 = vmatprep.subr.bf16.mxu1 %v1416_v3 }
 0x171   :  { %1252 = vmatpush3.bf16.msra.mxu1 %v1417_v4 }
 0x172   :  { %1253 = vmatprep.subr.bf16.mxu1 %v1418_v5 }
 0x175   :  { %1254 = vmatpush3.bf16.msra.mxu1 %v1419_v6 }
 0x176   :  { %1255 = vmatprep.subr.bf16.mxu1 %v1420_v7 }
 0x179   :  { %1256 = vmatpush3.bf16.msra.mxu1 %v1421_v8 }
 0x17a   :  { %1257 = vmatprep.subr.bf16.mxu1 %v1422_v9 }
 0x17d   :  { %1258 = vmatpush3.bf16.msra.mxu1 %v1423_v10 }
 0x17e   :  { %1259 = vmatprep.subr.bf16.mxu1 %v1424_v11 }
 0x181   :  { %1260 = vmatpush3.bf16.msra.mxu1 %v1425_v12 }
 0x237   :  { %v871_v15 = vpop.f32.mrb[0].mxu1 }
 0x238   :  { %v872_v16 = vadd.f32 %v871_v15, %v510_v14  ;;  %v873_v17 = vpop.f32.mrb[1].mxu1 }
 0x239   :  { %v875_v18 = vpop.f32.mrb[2].mxu1  ;;  %v874_v22 = vadd.f32 %v873_v17, %v514_v21 }
 0x23a   :  { %v876_v19 = vadd.f32 %v875_v18, %v510_v14  ;;  %v877_v20 = vpop.f32.mrb[3].mxu1 }
 0x23b   :  { %v878_v29 = vadd.f32 %v877_v20, %v514_v21 }
 0x23f   :  { %v914_v23 = vpop.f32.mrb[8].mxu0 }
 0x240   :  { %v915_v26 = vadd.f32 %v914_v23, %v872_v16  ;;  %v916_v28 = vpop.f32.mrb[9].mxu0 }
 0x241   :  { %v917_v30 = vadd.f32 %v916_v28, %v874_v22  ;;  %v918_v31 = vpop.f32.mrb[10].mxu0 }
 0x242   :  { %v919_v32 = vadd.f32 %v918_v31, %v876_v19  ;;  %v920_v33 = vpop.f32.mrb[11].mxu0  ;;  %v923_v25 = vmax.f32 %v915_v26, 0.0 }
 0x243   :  { %v921_v34 = vadd.f32 %v920_v33, %v878_v29  ;;  %v924_v36 = vmax.f32 %v917_v30, 0.0 }
 0x244   :  { %v925_v35 = vmax.f32 %v919_v32, 0.0 }
 0x245   :  { %v926_v37 = vmax.f32 %v921_v34, 0.0 }
 0x246   :  { %v927_v38 = vpack.c.bf16 %v925_v35, %v923_v25 }
 0x247   :  { %v928_v39 = vpack.c.bf16 %v926_v37, %v924_v36 }
 0x249   :  { %1096 = vmatprep.mubr.bf16.mxu1 %v928_v39 }
 0x24a   :  { %1097 = vmatmul.mubr.bf16.vlgmr.msra.gmra.mrb[4].mxu1 %v927_v38 }
 0x31d   :  { %v1261_v24 = vpop.f32.mrb[4].mxu1 }
 0x31e   :  { %v1262_v27 = vpop.f32.mrb[5].mxu1 }
 0x31f   :  { %v1263_v41 = vadd.f32 %v1262_v27, %v1261_v24  ;;  %v1264_v42 = vpop.f32.mrb[6].mxu1 }
 0x320   :  { %v1265_v43 = vpop.f32.mrb[7].mxu1 }
 0x321   :  { %v1266_v44 = vadd.f32 %v1265_v43, %v1264_v42  ;;  %v1099_v45 = vadd.f32 %v1263_v41, %v1226_v40 }
 0x323   :  { %v1102_v47 = vadd.f32 %v1266_v44, %v1226_v40  ;;  %v1105_v48 = vmax.f32 %v1099_v45, 0.0 }
 0x325   :  { %v1106_v49 = vmax.f32 %v1102_v47, 0.0  ;;  %v1114_v50 = vmul.f32 %v1243_v46, %v1105_v48 }
 0x327   :  { %1116 = vadd.xlane.f32.xlu0 %v1114_v50  ;;  %v1115_v51 = vmul.f32 %v1243_v46, %v1106_v49 }
 0x32b   :  { %1118 = vadd.xlane.f32.xlu0 %v1115_v51 }
 0x3b4   :  { %v1117_v53 = vpop.xlane.xlu0 %1116 }
 0x3b5   :  { %v1127_v54 = vadd.f32 %v1244_v52, %v1117_v53 }
 0x3b7   :  { %1130 = vst.msk [vmem:[%s1780_s11] sm:$0xff] %vm1129_vm4, %v1127_v54 }
 0x3b8   :  { %v1119_v55 = vpop.xlane.xlu0 %1118 }
 0x3b9   :  { %v1128_v56 = vadd.f32 %v1244_v52, %v1119_v55 }
 0x3bb   :  { %1131 = vst.msk [vmem:[%s1780_s11 + $0x8] sm:$0xff] %vm1129_vm4, %v1128_v56 }
 0x3bc   :  { %1136 = vsyncpa [#allocation4], 1 }
 0x3bd   :  { %1137 = vsyncpa [#allocation6], 1 }
 0x3be   :  { %1138 = vsyncpa [#allocation9], 1 }
 0x3bf   :  { %1139 = vsyncpa [#allocation12], 1 }

</bundles_post_ra>
